<compile_context>
chip_gen: v7x
topology: tpu7x:2x2x1
jax: 0.10.0
libtpu: 0.0.40
codegen_flags: <defaults>
</compile_context>

<pallas_src>
import functools
import math

import jax
import jax.numpy as jnp
from jax.experimental import pallas as pl
from jax.experimental.pallas import tpu as pltpu


# ----------------------------------------------------------------------------- kernels
def _layer_norm(x, gamma, beta, eps=1e-5):
    # x: (TQ, D) f32, gamma/beta: (1, D); biased variance (PyTorch LayerNorm).
    mean = jnp.mean(x, axis=-1, keepdims=True)
    var = jnp.mean(jnp.square(x - mean), axis=-1, keepdims=True)
    inv = jax.lax.rsqrt(var + eps)
    return (x - mean) * inv * gamma + beta


def kv_proj_kernel(x_ref, wkv_ref, bkv_ref, kv_ref):
    # x_ref: (1, TS, D) bf16; wkv: (D, 2D) bf16; bkv: (1, 2D) f32; kv out: (1, TS, 2D) bf16
    acc = jnp.dot(x_ref[0], wkv_ref[...], preferred_element_type=jnp.float32)
    kv_ref[0] = (acc + bkv_ref[...]).astype(kv_ref.dtype)


def encoder_layer_kernel(
    x_ref, kv_ref,
    wq_ref, bq_ref, wo_ref, bo_ref,
    w1_ref, b1_ref, w2_ref, b2_ref,
    gamma_ref, beta_ref,
    out_ref,
    *, num_heads,
):
    f32 = jnp.float32
    cdt = wq_ref.dtype                                  # bf16 compute dtype

    xq = x_ref[0].astype(f32)                           # (TQ, D) residual / Q source
    TQ, D = xq.shape
    H = num_heads
    dh = D // H
    scale = 1.0 / math.sqrt(dh)

    # Fused, lane-dense Q projection; fold the softmax scale into q in f32
    # (one multiply on a (TQ,D) tensor instead of on (H,TQ,S) scores).
    q_full = jnp.dot(xq.astype(cdt), wq_ref[...], preferred_element_type=f32)
    q_full = (q_full + bq_ref[...]) * scale             # (TQ, D)

    kv = kv_ref[0]                                      # (S, 2D) bf16 = [K | V]
    wo = wo_ref[...]                                    # (D, D) bf16

    # ---- per-head attention: only one (TQ,S) score slab live at a time ------
    attn = jnp.zeros((TQ, D), f32)
    for h in range(H):
        lo, hi = h * dh, (h + 1) * dh                   # 128-aligned lane slices
        q_h = q_full[:, lo:hi].astype(cdt)              # (TQ, dh)
        k_h = kv[:, lo:hi]                              # (S, dh) bf16
        v_h = kv[:, D + lo:D + hi]                      # (S, dh) bf16

        s = jnp.einsum("qc,sc->qs", q_h, k_h,
                       preferred_element_type=f32)      # (TQ, S)
        s = s - jnp.max(s, axis=-1, keepdims=True)
        p = jnp.exp(s)
        p = p * pl.reciprocal(jnp.sum(p, axis=-1, keepdims=True), approx=True)

        ctx = jnp.einsum("qs,sc->qc", p.astype(cdt), v_h,
                         preferred_element_type=f32)    # (TQ, dh)
        # Output projection: lane-dense (TQ,dh)@(dh,D) partial, accumulated in f32.
        attn = attn + jnp.dot(ctx.astype(cdt), wo[lo:hi, :],
                              preferred_element_type=f32)
    attn = attn + bo_ref[...]

    # ---- residual + layer norm #1 --------------------------------------------
    gamma = gamma_ref[...]
    beta = beta_ref[...]
    n1 = _layer_norm(xq + attn, gamma, beta)            # (TQ, D)

    # ---- position-wise feed-forward ------------------------------------------
    h1 = jnp.dot(n1.astype(cdt), w1_ref[...],
                 preferred_element_type=f32) + b1_ref[...]           # (TQ, F)
    h1 = jnp.maximum(h1, 0.0)                                        # ReLU
    ff = jnp.dot(h1.astype(cdt), w2_ref[...],
                 preferred_element_type=f32) + b2_ref[...]           # (TQ, D)

    # ---- residual + layer norm #2 (same LayerNorm params, as in the module) --
    out_ref[0] = _layer_norm(n1 + ff, gamma, beta).astype(out_ref.dtype)


# ----------------------------------------------------------------------------- wrapper
def _vmem_limit_bytes():
    # Generation-aware limit: ~80% of physical VMEM (v5e/v6e: 128 MiB, v7x: 64 MiB).
    try:
        return int(pltpu.get_tpu_info().vmem_capacity_bytes * 0.8)
    except Exception:
        return 64 * 1024 * 1024


def encoder_layer(x, params, *, num_heads, block_q=None, block_kv=None,
                  compute_dtype=jnp.bfloat16):
    B, S, D = x.shape
    H = num_heads
    assert D % H == 0
    F = params["w1"].shape[1]
    cd = compute_dtype

    if block_q is None:
        block_q = min(S, 256)
    assert S % block_q == 0, "block_q must divide S"
    if block_kv is None:
        block_kv = min(S, 256)
    assert S % block_kv == 0, "block_kv must divide S"

    vmem_limit = _vmem_limit_bytes()
    x_bf = x.astype(cd)

    # ---- K/V projection, once per batch (not once per query tile) -------------
    wkv = jnp.concatenate([params["wk"], params["wv"]], axis=1).astype(cd)  # (D, 2D)
    bkv = jnp.concatenate([params["bk"], params["bv"]], axis=1)             # (1, 2D)

    kv = pl.pallas_call(
        kv_proj_kernel,
        out_shape=jax.ShapeDtypeStruct((B, S, 2 * D), cd),
        grid_spec=pltpu.PrefetchScalarGridSpec(
            num_scalar_prefetch=0,
            grid=(B, S // block_kv),
            in_specs=[
                pl.BlockSpec((1, block_kv, D), lambda b, t: (b, t, 0)),
                pl.BlockSpec((D, 2 * D), lambda b, t: (0, 0)),
                pl.BlockSpec((1, 2 * D), lambda b, t: (0, 0)),
            ],
            out_specs=pl.BlockSpec((1, block_kv, 2 * D), lambda b, t: (b, t, 0)),
        ),
        compiler_params=pltpu.CompilerParams(
            dimension_semantics=("parallel", "parallel"),
            vmem_limit_bytes=vmem_limit,
        ),
    )(x_bf, wkv, bkv)

    # ---- main fused attention + FFN kernel -------------------------------------
    wq = params["wq"].astype(cd)
    wo = params["wo"].astype(cd)
    w1 = params["w1"].astype(cd)
    w2 = params["w2"].astype(cd)

    def _const(shape):
        return pl.BlockSpec(shape, lambda b, t, _n=len(shape): (0,) * _n)

    kernel = functools.partial(encoder_layer_kernel, num_heads=H)

    grid_spec = pltpu.PrefetchScalarGridSpec(
        num_scalar_prefetch=0,
        grid=(B, S // block_q),
        in_specs=[
            pl.BlockSpec((1, block_q, D), lambda b, t: (b, t, 0)),   # x query tile (f32)
            pl.BlockSpec((1, S, 2 * D), lambda b, t: (b, 0, 0)),     # KV slab (bf16), q-tile invariant
            _const((D, D)), _const((1, D)),                          # wq, bq
            _const((D, D)), _const((1, D)),                          # wo, bo
            _const((D, F)), _const((1, F)),                          # w1, b1
            _const((F, D)), _const((1, D)),                          # w2, b2
            _const((1, D)), _const((1, D)),                          # gamma, beta
        ],
        out_specs=pl.BlockSpec((1, block_q, D), lambda b, t: (b, t, 0)),
    )

    return pl.pallas_call(
        kernel,
        out_shape=jax.ShapeDtypeStruct((B, S, D), x.dtype),
        grid_spec=grid_spec,
        compiler_params=pltpu.CompilerParams(
            dimension_semantics=("parallel", "parallel"),   # independent (b, q-tile) work
            vmem_limit_bytes=vmem_limit,
        ),
    )(x, kv, wq, params["bq"], wo, params["bo"],
      w1, params["b1"], w2, params["b2"], params["gamma"], params["beta"])


# ----------------------------------------------------------------------------- reference
def encoder_layer_ref(x, params, *, num_heads):
    # Mirrors the kernel's mixed precision (bf16 matmul operands, f32 accumulate).
    B, S, D = x.shape
    dh = D // num_heads
    bf = lambda a: a.astype(jnp.bfloat16)
    mm = lambda a, b: jnp.matmul(bf(a), bf(b), preferred_element_type=jnp.float32)

    def ln(y):
        mean = jnp.mean(y, axis=-1, keepdims=True)
        var = jnp.mean((y - mean) ** 2, axis=-1, keepdims=True)
        return (y - mean) / jnp.sqrt(var + 1e-5) * params["gamma"] + params["beta"]

    q = (mm(x, params["wq"]) + params["bq"]) / math.sqrt(dh)
    k = mm(x, params["wk"]) + params["bk"]
    v = mm(x, params["wv"]) + params["bv"]
    q = q.reshape(B, S, num_heads, dh).transpose(0, 2, 1, 3)
    k = k.reshape(B, S, num_heads, dh).transpose(0, 2, 1, 3)
    v = v.reshape(B, S, num_heads, dh).transpose(0, 2, 1, 3)
    s = jnp.einsum("bhqd,bhkd->bhqk", bf(q), bf(k),
                   preferred_element_type=jnp.float32)
    p = jax.nn.softmax(s, axis=-1)
    a = jnp.einsum("bhqk,bhkd->bhqd", bf(p), bf(v),
                   preferred_element_type=jnp.float32)
    a = a.transpose(0, 2, 1, 3).reshape(B, S, D)
    a = mm(a, params["wo"]) + params["bo"]
    n1 = ln(x + a)
    ff = mm(jax.nn.relu(mm(n1, params["w1"]) + params["b1"]), params["w2"]) + params["b2"]
    return ln(n1 + ff)


# ----------------------------------------------------------------------------- main
if __name__ == "__main__":
    # Small but lane-aligned shapes: D, dh, F multiples of 128; S multiple of block_q.
    B, S, D = 2, 128, 256
    H = 2                         # head dim dh = 128 (full lane width)
    F = 4 * D                     # feed-forward hidden

    key = jax.random.PRNGKey(0)
    keys = jax.random.split(key, 16)
    init = lambda k, shape, scale: (scale * jax.random.normal(k, shape)).astype(jnp.float32)

    params = {
        "wq": init(keys[0], (D, D), 0.1), "bq": init(keys[1], (1, D), 0.01),
        "wk": init(keys[2], (D, D), 0.1), "bk": init(keys[3], (1, D), 0.01),
        "wv": init(keys[4], (D, D), 0.1), "bv": init(keys[5], (1, D), 0.01),
        "wo": init(keys[6], (D, D), 0.1), "bo": init(keys[7], (1, D), 0.01),
        "w1": init(keys[8], (D, F), 0.1), "b1": init(keys[9], (1, F), 0.01),
        "w2": init(keys[10], (F, D), 0.1), "b2": init(keys[11], (1, D), 0.01),
        "gamma": jnp.ones((1, D), jnp.float32),
        "beta": jnp.zeros((1, D), jnp.float32),
    }

    x = jax.random.normal(keys[12], (B, S, D), dtype=jnp.float32)

    out = encoder_layer(x, params, num_heads=H)       # grid = (B, S // 128)
    out = jax.block_until_ready(out)

    ref = encoder_layer_ref(x, params, num_heads=H)
    assert out.shape == (B, S, D)
    max_err = float(jnp.max(jnp.abs(out - ref)))
    assert jnp.allclose(out, ref, atol=2e-2, rtol=2e-2), f"mismatch vs reference (max abs err {max_err})"

    print("KERNEL_OK")
</pallas_src>

<mosaic_0001>
module attributes {stable_mosaic.version = 11 : i64} {
  func.func @kv_proj_kernel(%arg0: i32, %arg1: i32, %arg2: memref<1x128x256xbf16, #tpu.memory_space<vmem>>, %arg3: memref<256x512xbf16, #tpu.memory_space<vmem>>, %arg4: memref<1x512xf32, #tpu.memory_space<vmem>>, %arg5: memref<1x128x512xbf16, #tpu.memory_space<vmem>>) attributes {dimension_semantics = [#tpu.dimension_semantics<parallel>, #tpu.dimension_semantics<parallel>], iteration_bounds = array<i64: 2, 1>, scalar_prefetch = 0 : i64, scratch_operands = 0 : i64, tpu.core_type = #tpu.core_type<tc>, window_params = [{transform_indices = @transform_0, window_bounds = array<i64: 1, 128, 256>}, {pipeline_mode = #tpu.pipeline_mode<synchronous>, transform_indices = @transform_1, window_bounds = array<i64: 256, 512>}, {pipeline_mode = #tpu.pipeline_mode<synchronous>, transform_indices = @transform_2, window_bounds = array<i64: 1, 512>}, {transform_indices = @transform_3, window_bounds = array<i64: 1, 128, 512>}]} {
    %c0 = arith.constant 0 : index
    %c0_0 = arith.constant 0 : index
    %c0_1 = arith.constant 0 : index
    %0 = vector.load %arg2[%c0, %c0_0, %c0_1] : memref<1x128x256xbf16, #tpu.memory_space<vmem>>, vector<1x128x256xbf16>
    %1 = vector.shape_cast %0 : vector<1x128x256xbf16> to vector<128x256xbf16>
    %c0_2 = arith.constant 0 : index
    %c0_3 = arith.constant 0 : index
    %2 = vector.load %arg3[%c0_2, %c0_3] : memref<256x512xbf16, #tpu.memory_space<vmem>>, vector<256x512xbf16>
    %cst = arith.constant dense<0.000000e+00> : vector<128x512xf32>
    %3 = tpu.matmul %1, %2, %cst {dimension_numbers = #tpu.dot_dimension_numbers<[1], [0], [0], [1], [0, 0, 1, 1], [], []>} : vector<128x256xbf16>, vector<256x512xbf16>, vector<128x512xf32> -> vector<128x512xf32>
    %c0_4 = arith.constant 0 : index
    %c0_5 = arith.constant 0 : index
    %4 = vector.load %arg4[%c0_4, %c0_5] : memref<1x512xf32, #tpu.memory_space<vmem>>, vector<1x512xf32>
    %5 = vector.broadcast %4 : vector<1x512xf32> to vector<128x512xf32>
    %6 = arith.addf %3, %5 : vector<128x512xf32>
    %7 = arith.truncf %6 : vector<128x512xf32> to vector<128x512xbf16>
    %c0_6 = arith.constant 0 : index
    %c0_7 = arith.constant 0 : index
    %c0_8 = arith.constant 0 : index
    %8 = vector.load %arg5[%c0_6, %c0_7, %c0_8] : memref<1x128x512xbf16, #tpu.memory_space<vmem>>, vector<1x128x512xbf16>
    %9 = vector.shape_cast %8 : vector<1x128x512xbf16> to vector<128x512xbf16>
    %10 = vector.shape_cast %7 : vector<128x512xbf16> to vector<1x128x512xbf16>
    tpu.vector_store %arg5[%c0_6, %c0_7, %c0_8], %10 {strides = array<i32>} : memref<1x128x512xbf16, #tpu.memory_space<vmem>>, vector<1x128x512xbf16>,
    return
  }
  func.func @transform_0(%arg0: i32, %arg1: i32) -> (i32, i32, i32) {
    %c0_i32 = arith.constant 0 : i32
    %c0_i32_0 = arith.constant 0 : i32
    return %arg0, %arg1, %c0_i32 : i32, i32, i32
  }
  func.func @transform_1(%arg0: i32, %arg1: i32) -> (i32, i32) {
    %c0_i32 = arith.constant 0 : i32
    %c0_i32_0 = arith.constant 0 : i32
    %c0_i32_1 = arith.constant 0 : i32
    return %c0_i32, %c0_i32_0 : i32, i32
  }
  func.func @transform_2(%arg0: i32, %arg1: i32) -> (i32, i32) {
    %c0_i32 = arith.constant 0 : i32
    %c0_i32_0 = arith.constant 0 : i32
    %c0_i32_1 = arith.constant 0 : i32
    return %c0_i32, %c0_i32_0 : i32, i32
  }
  func.func @transform_3(%arg0: i32, %arg1: i32) -> (i32, i32, i32) {
    %c0_i32 = arith.constant 0 : i32
    %c0_i32_0 = arith.constant 0 : i32
    return %arg0, %arg1, %c0_i32 : i32, i32, i32
  }
}

</mosaic_0001>

<bundles_post_ra>
// kernel: tpu_custom_call.1
= control target key start
LH: loop header
LB: loop body
LE: loop exit
PB: predicated region body
PF: predicated region fallthrough
CT: control target
= control target key end

     0   :  { %8 = vsyncpa [#allocation3], 0  ;;  %s2271_s0 = inlined_call_operand.hbm [shape: bf16[2,128,256], index: 0, kind: input, shape index: {}]   ;;  %s2272_s1 = inlined_call_operand.hbm [shape: bf16[256,512], index: 1, kind: input, shape index: {}]   ;;  %s2273_s2 = inlined_call_operand.hbm [shape: f32[1,512], index: 2, kind: input, shape index: {}]   ;;  %s2274_s3 = inlined_call_operand.hbm [shape: bf16[2,128,512], index: 3, kind: output, shape index: {}]  }
   0x1   :  { %10 = vsyncpa [#allocation3 + $0x1], 0 }
   0x2   :  { %11 = vsyncpa [#allocation6], 0 }
   0x3   :  { %12 = vsyncpa [#allocation4], 0 }
   0x4   :  { %14 = vsyncpa [#allocation4 + $0x1], 0  ;;  %s1890_s12 = smov 0   ;;  %s1892_s13 = smov 0  }
   0x5   :  { %s1894_s14 = smov 0   ;;  %s1896_s15 = smov 0  }
   0x6   :  { %s1898_s16 = smov 0   ;;  %s1900_s17 = smov 0  }
   0x7 LB: > { %s1312_s18 = sadd.s32 4294967295, %s1858_s17   ;;  %s1313_s19 = sadd.s32 4294967294, %s1858_s17   ;;  %s1858_s17 = sphi %s1900_s17, %s20_s17   ;;  %s1854_s16 = sphi %s1898_s16, %s2296_s16   ;;  %s1850_s15 = sphi %s1896_s15, %s2295_s15   ;;  %s1846_s14 = sphi %s1894_s14, %s2294_s14   ;;  %s1842_s13 = sphi %s1892_s13, %s2293_s13   ;;  %s1838_s12 = sphi %s1890_s12, %s2292_s12  }
   0x8   : > { %p54_p0 = scmp.ne.s32.totalorder %s1842_s13, %s1838_s12  ;;  %p1924_p1 = scmp.eq.s32.totalorder %s1312_s18, 0 }
   0x9   : > { %p1928_p2 = scmp.eq.s32.totalorder %s1312_s18, 1  ;;  %p128_p3 = scmp.eq.s32.totalorder %s1313_s19, 1 }
   0xa   : > { %s2279_s20 = scalar_select %p1924_p1, 1, 0 }
   0xb   : > { %p1934_p4 = por %p1924_p1, %p54_p0  ;;  %p1314_p5 = scmp.ge.s32.totalorder %s1858_s17, 1 }
   0xc   : > { %p1939_p6 = por %p128_p3, %p54_p0  ;;  %p135_p7 = scmp.lt.s32.totalorder %s1858_s17, 3 }
   0xd   : > { %s2281_s22 = scalar_select %p1934_p4, 1, 0 }
   0xe   : > { %s2282_s23 = scalar_select %p1939_p6, 1, 0 }
   0xf   : > { %p1944_p8 = pnand %p1314_p5, %p135_p7  ;;  %s1860_s25 = smov [#allocation5]  }
  0x10   : > { %s147_s26 = sshll.u32 %s1860_s25, 4  ;;  %s1861_s28 = smov [#allocation7]   ;;  %s1948_s26 = int_to_ptr.vmem [resolvable:$true] %s147_s26 }
  0x11   : > { %p1489_p9 = pneg %p1944_p8  ;;  %s161_s29 = sshll.u32 %s1861_s28, 4  ;;  %s1959_s29 = int_to_ptr.vmem [resolvable:$true] %s161_s29 }
  0x12   : > { %s1686_s5 = scalar_lea.hbm %s2272_s1, 8192 }
  0x13   : > { %p1955_p11 = pnand %p1489_p9, %p1924_p1  ;;  %p1687_p12 = scmp.ne.s32.totalorder %s2272_s1, %s1686_s5 }
  0x14   : > { %p1693_p5 = scmp.lt.u32.totalorder %s1686_s5, %s2272_s1 }
  0x15   : > { %p1688_p13 = pneg %p1955_p11 }
  0x17   : > { %p1689_p0 = pnand %p1688_p13, %p1687_p12 }
  0x19   : > { %p1690_p3 = pneg %p1689_p0 }
  0x1b   : > { %p1695_p7 = pnand %p1693_p5, %p1690_p3 }
  0x1d   : > { %1698 = shalt.err (!%p1695_p7)
}
  0x1e   : > { %s1699_s10 = scalar_lea.vmem %s1948_s26, 8192  ;;  %p1707_p1 = scmp.lt.s32.totalorder %s1948_s26, %s1948_s26 }
  0x1f   : > { %p1700_p9 = scmp.ne.s32.totalorder %s1948_s26, %s1699_s10  ;;  %p1708_p12 = scmp.lt.s32.totalorder %s1699_s10, %s1699_s10 }
  0x21   : > { %p1702_p10 = pnand %p1700_p9, %p1688_p13  ;;  %p1709_p0 = por %p1708_p12, %p1707_p1 }
  0x23   : > { %p1703_p6 = pneg %p1702_p10 }
  0x25   : > { %p1710_p4 = pnand %p1709_p0, %p1703_p6 }
  0x27   : > { %1713 = shalt.err (!%p1710_p4)
}
  0x28   : > { %s1862_s11 = smov 256   ;;  %s1863_s18 = smov 16  }
  0x29   : > { %1492 = dma.hbm_to_vmem [thread:$0]  (!%p1955_p11), %s2272_s1, 8192, %s1948_s26, [#allocation6], %s1862_s11, %s1862_s11, %s1863_s18  }
  0x2a   : > { %s1714_s4 = scalar_lea.hbm %s2273_s2, 64 }
  0x2b   : > { %p1715_p1 = scmp.ne.s32.totalorder %s2273_s2, %s1714_s4  ;;  %p1721_p10 = scmp.lt.u32.totalorder %s1714_s4, %s2273_s2 }
  0x2d   : > { %p1717_p4 = pnand %p1715_p1, %p1688_p13 }
  0x2f   : > { %p1718_p6 = pneg %p1717_p4 }
  0x31   : > { %p1723_p3 = pnand %p1721_p10, %p1718_p6 }
  0x33   : > { %1726 = shalt.err (!%p1723_p3)
}
  0x34   : > { %s1727_s26 = scalar_lea.vmem %s1959_s29, 64  ;;  %p1735_p12 = scmp.lt.s32.totalorder %s1959_s29, %s1959_s29 }
  0x35   : > { %p1728_p5 = scmp.ne.s32.totalorder %s1959_s29, %s1727_s26  ;;  %p1736_p0 = scmp.lt.s32.totalorder %s1727_s26, %s1727_s26 }
  0x37   : > { %p1730_p7 = pnand %p1728_p5, %p1688_p13  ;;  %p1737_p1 = por %p1736_p0, %p1735_p12 }
  0x39   : > { %p1731_p9 = pneg %p1730_p7 }
  0x3b   : > { %p1738_p4 = pnand %p1737_p1, %p1731_p9 }
  0x3d   : > { %1741 = shalt.err (!%p1738_p4)
}
  0x3e   : > { %1495 = dma.hbm_to_vmem [thread:$0]  (!%p1955_p11), %s2273_s2, 64, %s1959_s29, [#allocation6]  }
  0x3f   : > { %s32_s11 = sadd.s32 1, %s1854_s16  ;;  %s41_s18 = sadd.s32 1, %s1846_s14 }
  0x40   : > { %p34_p13 = scmp.ge.s32.totalorder %s32_s11, 2  ;;  %p48_p6 = scmp.ne.s32.totalorder %s1846_s14, %s1842_s13 }
  0x41   : > { %p49_p10 = scmp.eq.s32.totalorder %s1858_s17, 0  ;;  %p1506_p3 = scmp.lt.s32.totalorder %s1858_s17, 2 }
  0x42   : > { %s2298_s11 = smov (%p34_p13, %s32_s11), 0  ;;  %p2023_p7 = por %p1928_p2, %p48_p6 }
  0x43   : > { %p50_p5 = por %p49_p10, %p48_p6  ;;  %s36_s19 = ssub.s32 %s1854_s16, %s2298_s11 }
  0x44   : > { %s2285_s27 = scalar_select %p2023_p7, 1, 0 }
  0x45   : > { %s172_s25 = sand.u32 1, %s1846_s14   ;;  %p39_p9 = scmp.eq.s32.totalorder %s36_s19, 0 }
  0x46   : > { %s1318_s29 = sshll.u32 %s172_s25, 7  ;;  %s1443_s28 = sshll.u32 %s1854_s16, 11 }
  0x47   : > { %s2032_s30 = scalar_select %p39_p9, %s1846_s14, %s41_s18  }
  0x48   : > { %s2037_s6 = scalar_lea.hbm %s2271_s0, %s1443_s28  ;;  %s176_s21 = scalar_lea.vmem [#allocation2], %s1318_s29 }
  0x49   : > { %s186_s7 = sshll.u32 %s176_s21, 4  ;;  %p2041_p2 = pnand %p1506_p3, %p50_p5  ;;  %s2045_s7 = int_to_ptr.vmem [resolvable:$true] %s186_s7 }
  0x4a   : > { %s2047_s26 = scalar_lea.sflag [#allocation3], %s172_s25  ;;  %s1742_s9 = scalar_lea.hbm %s2037_s6, 2048 }
  0x4b   : > { %p1743_p11 = scmp.ne.s32.totalorder %s2037_s6, %s1742_s9  ;;  %p1744_p12 = pneg %p2041_p2 }
  0x4c   : > { %s1747_s19 = scalar_lea.hbm %s2271_s0, 4096  ;;  %p1748_p4 = scmp.lt.u32.totalorder %s2037_s6, %s2271_s0 }
  0x4d   : > { %p1745_p0 = pnand %p1744_p12, %p1743_p11  ;;  %p1749_p13 = scmp.lt.u32.totalorder %s1747_s19, %s1742_s9 }
  0x4e   : > { %p1751_p10 = scmp.lt.u32.totalorder %s1742_s9, %s2037_s6 }
  0x4f   : > { %p1746_p1 = pneg %p1745_p0  ;;  %p1750_p6 = por %p1749_p13, %p1748_p4 }
  0x51   : > { %p1752_p3 = por %p1751_p10, %p1750_p6 }
  0x53   : > { %p1753_p5 = pnand %p1752_p3, %p1746_p1 }
  0x55   : > { %1756 = shalt.err (!%p1753_p5)
}
  0x56   : > { %s1757_s25 = scalar_lea.vmem %s2045_s7, 2048  ;;  %s1864_s4 = smov [#allocation2]  }
  0x57   : > { %p1758_p9 = scmp.ne.s32.totalorder %s2045_s7, %s1757_s25  ;;  %s1762_s5 = sshll.u32 %s1864_s4, 4  ;;  %s1763_s5 = int_to_ptr.vmem [resolvable:$false] %s1762_s5 }
  0x58   : > { %s1764_s21 = scalar_lea.vmem %s1763_s5, 4096  ;;  %p1765_p7 = scmp.lt.s32.totalorder %s2045_s7, %s1763_s5 }
  0x59   : > { %p1760_p11 = pnand %p1758_p9, %p1744_p12  ;;  %p1766_p4 = scmp.lt.s32.totalorder %s1764_s21, %s1757_s25 }
  0x5b   : > { %p1761_p0 = pneg %p1760_p11  ;;  %p1767_p13 = por %p1766_p4, %p1765_p7 }
  0x5d   : > { %p1768_p6 = pnand %p1767_p13, %p1761_p0 }
  0x5f   : > { %1771 = shalt.err (!%p1768_p6)
}
  0x60   : > { %s1865_s9 = smov 128   ;;  %s1866_s10 = smov 8  }
  0x61   : > { %1499 = dma.hbm_to_vmem [thread:$0]  (!%p2041_p2), %s2037_s6, 2048, %s2045_s7, %s2047_s26, %s1865_s9, %s1865_s9, %s1866_s10  }
  0x62   : > { %198 = sbr.rel (%p1944_p8) target bundleno = 464 (0x1d0), region = 32  ;;  %s2078_s18 = sand.u32 (!%p1944_p8), 1, %s1842_s13  }
  0x63   : > { %s1322_s19 = sshll.u32 (!%p1944_p8), %s2078_s18, 7  ;;  %s201_s29 = scalar_lea.sflag (!%p1944_p8), [#allocation3], %s2078_s18 }
  0x64   : > { %s2082_s28 = scalar_lea.vmem (!%p1944_p8), [#allocation2], %s1322_s19  ;;  %p2287_p7 = scmp.ne.s32.totalorder (!%p1944_p8), %s2281_s22, 0 }
  0x69   : > { %1825 = dma.done.wait (%p2287_p7), %s201_s29, 2048  }
  0x6a   : > { %1827 = vsyncadd (%p2287_p7), %s201_s29, 4294965248  ;;  %p2288_p2 = scmp.ne.s32.totalorder %s2279_s20, 0 }
  0x6c   : > { %1829 = dma.done.wait (%p2288_p2), [#allocation6], 8256  }
  0x6d   : > { %1831 = vsyncadd (%p2288_p2), [#allocation6], 4294959040  ;;  %v1566_v0 = vld [vmem:[#allocation5 + $0x4] ss:$16 sps:$4 sm:$0xff]   ;;  %v1568_v1 = vld [vmem:[#allocation5 + $0xc] ss:$16 sps:$4 sm:$0xff]  }
  0x6e   : > { %739 = vmatprep.subr.bf16.mxu0 %v1566_v0  ;;  %v1570_v2 = vld [vmem:[#allocation5] ss:$16 sps:$4 sm:$0xff]   ;;  %v1571_v3 = vld [vmem:[#allocation5 + $0x8] ss:$16 sps:$4 sm:$0xff]   ;;  %852 = vmatprep.subr.bf16.mxu1 %v1568_v1  ;;  %v1572_v4 = vld [vmem:[#allocation5 + $0x24] ss:$16 sps:$4 sm:$0xff]  }
  0x6f   : > { %740 = vmatpush1.bf16.msra.mxu0 %v1570_v2  ;;  %853 = vmatpush1.bf16.msra.mxu1 %v1571_v3  ;;  %v1574_v5 = vld [vmem:[#allocation5 + $0x2c] ss:$16 sps:$4 sm:$0xff]   ;;  %v1576_v6 = vld [vmem:[#allocation5 + $0x20] ss:$16 sps:$4 sm:$0xff]   ;;  %v1577_v7 = vld [vmem:[#allocation5 + $0x28] ss:$16 sps:$4 sm:$0xff]  }
  0x70   : > { %741 = vmatprep.subr.bf16.mxu0 %v1572_v4  ;;  %854 = vmatprep.subr.bf16.mxu1 %v1574_v5  ;;  %v1578_v8 = vld [vmem:[#allocation5 + $0x44] ss:$16 sps:$4 sm:$0xff]   ;;  %v1580_v9 = vld [vmem:[#allocation5 + $0x4c] ss:$16 sps:$4 sm:$0xff]   ;;  %v1582_v10 = vld [vmem:[#allocation5 + $0x40] ss:$16 sps:$4 sm:$0xff]  }
  0x71   : > { %v1583_v11 = vld [vmem:[#allocation5 + $0x48] ss:$16 sps:$4 sm:$0xff]   ;;  %v1584_v12 = vld [vmem:[#allocation5 + $0x64] ss:$16 sps:$4 sm:$0xff]   ;;  %v1586_v13 = vld [vmem:[#allocation5 + $0x6c] ss:$16 sps:$4 sm:$0xff]  }
  0x72   : > { %v1588_v14 = vld [vmem:[#allocation5 + $0x60] ss:$16 sps:$4 sm:$0xff]   ;;  %v1589_v15 = vld [vmem:[#allocation5 + $0x68] ss:$16 sps:$4 sm:$0xff]   ;;  %v1590_v16 = vld [vmem:[#allocation5 + $0x84] ss:$16 sps:$4 sm:$0xff]  }
  0x73   : > { %742 = vmatpush1.bf16.msra.mxu0 %v1576_v6  ;;  %855 = vmatpush1.bf16.msra.mxu1 %v1577_v7  ;;  %v1592_v17 = vld [vmem:[#allocation5 + $0x8c] ss:$16 sps:$4 sm:$0xff]   ;;  %v1594_v18 = vld [vmem:[#allocation5 + $0x80] ss:$16 sps:$4 sm:$0xff]   ;;  %v1595_v19 = vld [vmem:[#allocation5 + $0x88] ss:$16 sps:$4 sm:$0xff]  }
  0x74   : > { %743 = vmatprep.subr.bf16.mxu0 %v1578_v8  ;;  %856 = vmatprep.subr.bf16.mxu1 %v1580_v9  ;;  %v1596_v20 = vld [vmem:[#allocation5 + $0xa4] ss:$16 sps:$4 sm:$0xff]   ;;  %v1598_v21 = vld [vmem:[#allocation5 + $0xac] ss:$16 sps:$4 sm:$0xff]   ;;  %v1600_v22 = vld [vmem:[#allocation5 + $0xa0] ss:$16 sps:$4 sm:$0xff]  }
  0x75   : > { %v1601_v23 = vld [vmem:[#allocation5 + $0xa8] ss:$16 sps:$4 sm:$0xff]   ;;  %v1602_v24 = vld [vmem:[#allocation5 + $0xc4] ss:$16 sps:$4 sm:$0xff]   ;;  %v1604_v25 = vld [vmem:[#allocation5 + $0xcc] ss:$16 sps:$4 sm:$0xff]  }
  0x76   : > { %v1606_v26 = vld [vmem:[#allocation5 + $0xc0] ss:$16 sps:$4 sm:$0xff]   ;;  %v1607_v27 = vld [vmem:[#allocation5 + $0xc8] ss:$16 sps:$4 sm:$0xff]   ;;  %v1608_v28 = vld [vmem:[#allocation5 + $0xe4] ss:$16 sps:$4 sm:$0xff]  }
  0x77   : > { %744 = vmatpush1.bf16.msra.mxu0 %v1582_v10  ;;  %857 = vmatpush1.bf16.msra.mxu1 %v1583_v11  ;;  %v1610_v29 = vld [vmem:[#allocation5 + $0xec] ss:$16 sps:$4 sm:$0xff]   ;;  %v1612_v30 = vld [vmem:[#allocation5 + $0xe0] ss:$16 sps:$4 sm:$0xff]   ;;  %v1613_v31 = vld [vmem:[#allocation5 + $0xe8] ss:$16 sps:$4 sm:$0xff]  }
  0x78   : > { %745 = vmatprep.subr.bf16.mxu0 %v1584_v12  ;;  %858 = vmatprep.subr.bf16.mxu1 %v1586_v13  ;;  %v1614_v32 = vld [vmem:[#allocation5 + $0x104] ss:$16 sps:$4 sm:$0xff]   ;;  %v1616_v33 = vld [vmem:[#allocation5 + $0x10c] ss:$16 sps:$4 sm:$0xff]   ;;  %v1618_v34 = vld [vmem:[#allocation5 + $0x100] ss:$16 sps:$4 sm:$0xff]  }
  0x79   : > { %v1619_v35 = vld [vmem:[#allocation5 + $0x108] ss:$16 sps:$4 sm:$0xff]   ;;  %v1620_v36 = vld [vmem:[#allocation5 + $0x124] ss:$16 sps:$4 sm:$0xff]   ;;  %v1622_v37 = vld [vmem:[#allocation5 + $0x12c] ss:$16 sps:$4 sm:$0xff]  }
  0x7a   : > { %v1624_v38 = vld [vmem:[#allocation5 + $0x120] ss:$16 sps:$4 sm:$0xff]   ;;  %v1625_v39 = vld [vmem:[#allocation5 + $0x128] ss:$16 sps:$4 sm:$0xff]   ;;  %v1626_v40 = vld [vmem:[#allocation5 + $0x144] ss:$16 sps:$4 sm:$0xff]  }
  0x7b   : > { %746 = vmatpush1.bf16.msra.mxu0 %v1588_v14  ;;  %859 = vmatpush1.bf16.msra.mxu1 %v1589_v15  ;;  %v1628_v41 = vld [vmem:[#allocation5 + $0x14c] ss:$16 sps:$4 sm:$0xff]   ;;  %v1630_v42 = vld [vmem:[#allocation5 + $0x140] ss:$16 sps:$4 sm:$0xff]   ;;  %v1631_v43 = vld [vmem:[#allocation5 + $0x148] ss:$16 sps:$4 sm:$0xff]  }
  0x7c   : > { %747 = vmatprep.subr.bf16.mxu0 %v1590_v16  ;;  %860 = vmatprep.subr.bf16.mxu1 %v1592_v17  ;;  %v1632_v44 = vld [vmem:[#allocation5 + $0x164] ss:$16 sps:$4 sm:$0xff]   ;;  %v1634_v45 = vld [vmem:[#allocation5 + $0x16c] ss:$16 sps:$4 sm:$0xff]   ;;  %v1636_v46 = vld [vmem:[#allocation5 + $0x160] ss:$16 sps:$4 sm:$0xff]   ;;  %v319_v16 = vlaneseq }
  0x7d   : > { %v1637_v47 = vld [vmem:[#allocation5 + $0x168] ss:$16 sps:$4 sm:$0xff]   ;;  %v1664_v48 = vld [vmem:[%s2082_s28 + $0x4] ss:$8 sps:$4 sm:$0xff]   ;;  %v1642_v51 = vld [vmem:[#allocation5 + $0x180] ss:$16 sps:$4 sm:$0xff]  }
  0x7e   : > { %v1638_v49 = vld [vmem:[#allocation5 + $0x184] ss:$16 sps:$4 sm:$0xff]   ;;  %v1640_v50 = vld [vmem:[#allocation5 + $0x18c] ss:$16 sps:$4 sm:$0xff]   ;;  %771 = vmatprep.mubr.bf16.mxu0 %v1664_v48  ;;  %884 = vmatprep.mubr.bf16.mxu1 %v1664_v48  ;;  %v1643_v52 = vld [vmem:[#allocation5 + $0x188] ss:$16 sps:$4 sm:$0xff]  }
  0x7f   : > { %748 = vmatpush1.bf16.msra.mxu0 %v1594_v18  ;;  %861 = vmatpush1.bf16.msra.mxu1 %v1595_v19  ;;  %v1644_v53 = vld [vmem:[#allocation5 + $0x1a4] ss:$16 sps:$4 sm:$0xff]   ;;  %v1646_v54 = vld [vmem:[#allocation5 + $0x1ac] ss:$16 sps:$4 sm:$0xff]   ;;  %v1648_v55 = vld [vmem:[#allocation5 + $0x1a0] ss:$16 sps:$4 sm:$0xff]  }
  0x80   : > { %749 = vmatprep.subr.bf16.mxu0 %v1596_v20  ;;  %862 = vmatprep.subr.bf16.mxu1 %v1598_v21  ;;  %v1649_v56 = vld [vmem:[#allocation5 + $0x1a8] ss:$16 sps:$4 sm:$0xff]   ;;  %v1650_v57 = vld [vmem:[#allocation5 + $0x1c4] ss:$16 sps:$4 sm:$0xff]   ;;  %v1652_v58 = vld [vmem:[#allocation5 + $0x1cc] ss:$16 sps:$4 sm:$0xff]  }
  0x81   : > { %v1654_v59 = vld [vmem:[#allocation5 + $0x1c0] ss:$16 sps:$4 sm:$0xff]   ;;  %v1655_v60 = vld [vmem:[#allocation5 + $0x1c8] ss:$16 sps:$4 sm:$0xff]   ;;  %v1656_v61 = vld [vmem:[#allocation5 + $0x1e4] ss:$16 sps:$4 sm:$0xff]  }
  0x82   : > { %v1658_v62 = vld [vmem:[#allocation5 + $0x1ec] ss:$16 sps:$4 sm:$0xff]   ;;  %v1660_v63 = vld [vmem:[#allocation5 + $0x1e0] ss:$16 sps:$4 sm:$0xff]   ;;  %v1661_v0 = vld [vmem:[#allocation5 + $0x1e8] ss:$16 sps:$4 sm:$0xff]  }
  0x83   : > { %750 = vmatpush1.bf16.msra.mxu0 %v1600_v22  ;;  %863 = vmatpush1.bf16.msra.mxu1 %v1601_v23  ;;  %v1662_v1 = vld [vmem:[%s2082_s28] ss:$8 sps:$4 sm:$0xff]   ;;  %v1665_v2 = vld [vmem:[%s2082_s28 + $0x14] ss:$8 sps:$4 sm:$0xff]   ;;  %v1667_v3 = vld [vmem:[%s2082_s28 + $0x10] ss:$8 sps:$4 sm:$0xff]  }
  0x84   : > { %751 = vmatprep.subr.bf16.mxu0 %v1602_v24  ;;  %864 = vmatprep.subr.bf16.mxu1 %v1604_v25  ;;  %v1668_v4 = vld [vmem:[%s2082_s28 + $0x24] ss:$8 sps:$4 sm:$0xff]   ;;  %v1670_v5 = vld [vmem:[%s2082_s28 + $0x20] ss:$8 sps:$4 sm:$0xff]   ;;  %v1671_v6 = vld [vmem:[%s2082_s28 + $0x34] ss:$8 sps:$4 sm:$0xff]  }
  0x85   : > { %v1673_v7 = vld [vmem:[%s2082_s28 + $0x30] ss:$8 sps:$4 sm:$0xff]   ;;  %v1674_v8 = vld [vmem:[%s2082_s28 + $0x44] ss:$8 sps:$4 sm:$0xff]   ;;  %v1676_v9 = vld [vmem:[%s2082_s28 + $0x40] ss:$8 sps:$4 sm:$0xff]  }
  0x86   : > { %v1677_v10 = vld [vmem:[%s2082_s28 + $0x54] ss:$8 sps:$4 sm:$0xff]   ;;  %v1679_v11 = vld [vmem:[%s2082_s28 + $0x50] ss:$8 sps:$4 sm:$0xff]   ;;  %v1680_v12 = vld [vmem:[%s2082_s28 + $0x64] ss:$8 sps:$4 sm:$0xff]  }
  0x87   : > { %752 = vmatpush1.bf16.msra.mxu0 %v1606_v26  ;;  %865 = vmatpush1.bf16.msra.mxu1 %v1607_v27  ;;  %v1682_v13 = vld [vmem:[%s2082_s28 + $0x60] ss:$8 sps:$4 sm:$0xff]   ;;  %v1683_v14 = vld [vmem:[%s2082_s28 + $0x74] ss:$8 sps:$4 sm:$0xff]   ;;  %v1685_v15 = vld [vmem:[%s2082_s28 + $0x70] ss:$8 sps:$4 sm:$0xff]  }
  0x88   : > { %753 = vmatprep.subr.bf16.mxu0 %v1608_v28  ;;  %866 = vmatprep.subr.bf16.mxu1 %v1610_v29  ;;  %v320_v17 = vshrl.u32 %v319_v16, 7  ;;  %v317_v20 = vld [vmem:[#allocation7] sm:$0xf]  ;;  %s1325_s20 = sshll.u32 %s2078_s18, 8  ;;  %s1476_s24 = sshll.u32 %s1850_s15, 12 }
  0x89   : > { %s2125_s22 = scalar_lea.vmem [#allocation8], %s1325_s20  ;;  %s2216_s15 = scalar_lea.hbm %s2274_s3, %s1476_s24 }
  0x8a   : > { %v321_v18 = vsub.s32 0, %v320_v17  ;;  %v329_v19 = vsub.s32 2, %v320_v17  ;;  %v325_v21 = vsub.s32 1, %v320_v17  ;;  %v333_v22 = vsub.s32 3, %v320_v17  ;;  %s1206_s6 = sshll.u32 %s2125_s22, 4  ;;  %s1190_s26 = scalar_lea.sflag [#allocation4], %s2078_s18  ;;  %s2218_s6 = int_to_ptr.vmem [resolvable:$true] %s1206_s6 }
  0x8b   : > { %754 = vmatpush1.bf16.msra.mxu0 %v1612_v30  ;;  %867 = vmatpush1.bf16.msra.mxu1 %v1613_v31  ;;  %s1772_s25 = scalar_lea.vmem %s2218_s6, 4096  ;;  %p2289_p12 = scmp.ne.s32.totalorder %s2285_s27, 0 }
  0x8c   : > { %755 = vmatprep.subr.bf16.mxu0 %v1614_v32  ;;  %868 = vmatprep.subr.bf16.mxu1 %v1616_v33  ;;  %v2108_v23 = vrot.slane %v317_v20, %v321_v18  ;;  %v2110_v24 = vrot.slane %v317_v20, %v329_v19  ;;  %v2112_v25 = vrot.slane %v317_v20, %v325_v21  ;;  %p1773_p8 = scmp.ne.s32.totalorder %s2218_s6, %s1772_s25  ;;  %s1867_s4 = smov [#allocation8]  }
  0x8d   : > { %v2114_v26 = vrot.slane %v317_v20, %v333_v22  ;;  %s1776_s5 = sshll.u32 %s1867_s4, 4  ;;  %s1777_s5 = int_to_ptr.vmem [resolvable:$false] %s1776_s5 }
  0x8e   : > { %p1774_p1 = pnand %p1773_p8, %p2289_p12  ;;  %s1778_s21 = scalar_lea.vmem %s1777_s5, 8192 }
  0x8f   : > { %756 = vmatpush1.bf16.msra.mxu0 %v1618_v34  ;;  %869 = vmatpush1.bf16.msra.mxu1 %v1619_v35  ;;  %p1779_p3 = scmp.lt.s32.totalorder %s2218_s6, %s1777_s5  ;;  %p1780_p5 = scmp.lt.s32.totalorder %s1778_s21, %s1772_s25 }
  0x90   : > { %757 = vmatprep.subr.bf16.mxu0 %v1620_v36  ;;  %870 = vmatprep.subr.bf16.mxu1 %v1622_v37  ;;  %p1775_p10 = pneg %p1774_p1 }
  0x91   : > { %p1781_p9 = por %p1780_p5, %p1779_p3 }
  0x93   : > { %758 = vmatpush1.bf16.msra.mxu0 %v1624_v38  ;;  %871 = vmatpush1.bf16.msra.mxu1 %v1625_v39  ;;  %p1782_p11 = pnand %p1781_p9, %p1775_p10 }
  0x94   : > { %759 = vmatprep.subr.bf16.mxu0 %v1626_v40  ;;  %872 = vmatprep.subr.bf16.mxu1 %v1628_v41 }
  0x97   : > { %760 = vmatpush1.bf16.msra.mxu0 %v1630_v42  ;;  %873 = vmatpush1.bf16.msra.mxu1 %v1631_v43 }
  0x98   : > { %761 = vmatprep.subr.bf16.mxu0 %v1632_v44  ;;  %874 = vmatprep.subr.bf16.mxu1 %v1634_v45 }
  0x9b   : > { %762 = vmatpush1.bf16.msra.mxu0 %v1636_v46  ;;  %875 = vmatpush1.bf16.msra.mxu1 %v1637_v47 }
  0x9c   : > { %763 = vmatprep.subr.bf16.mxu0 %v1638_v49  ;;  %876 = vmatprep.subr.bf16.mxu1 %v1640_v50 }
  0x9f   : > { %764 = vmatpush1.bf16.msra.mxu0 %v1642_v51  ;;  %877 = vmatpush1.bf16.msra.mxu1 %v1643_v52 }
  0xa0   : > { %765 = vmatprep.subr.bf16.mxu0 %v1644_v53  ;;  %878 = vmatprep.subr.bf16.mxu1 %v1646_v54 }
  0xa3   : > { %766 = vmatpush1.bf16.msra.mxu0 %v1648_v55  ;;  %879 = vmatpush1.bf16.msra.mxu1 %v1649_v56 }
  0xa4   : > { %767 = vmatprep.subr.bf16.mxu0 %v1650_v57  ;;  %880 = vmatprep.subr.bf16.mxu1 %v1652_v58 }
  0xa7   : > { %768 = vmatpush1.bf16.msra.mxu0 %v1654_v59  ;;  %881 = vmatpush1.bf16.msra.mxu1 %v1655_v60 }
  0xa8   : > { %769 = vmatprep.subr.bf16.mxu0 %v1656_v61  ;;  %882 = vmatprep.subr.bf16.mxu1 %v1658_v62 }
  0xab   : > { %770 = vmatpush1.bf16.msra.mxu0 %v1660_v63  ;;  %883 = vmatpush1.bf16.msra.mxu1 %v1661_v0 }
  0xae   : > { %772 = vmatmul.mubr.bf16.vlgmr.msra.gmra.mrb[0].mxu0 %v1662_v1  ;;  %885 = vmatmul.mubr.bf16.vlgmr.msra.gmra.mrb[0].mxu1 %v1662_v1 }
  0xaf   : > { %781 = vmatprep.mubr.bf16.mxu0 %v1665_v2  ;;  %894 = vmatprep.mubr.bf16.mxu1 %v1665_v2 }
  0xb6   : > { %782 = vmatmul.mubr.bf16.gmra.mrb[4].mxu0 %v1667_v3  ;;  %895 = vmatmul.mubr.bf16.gmra.mrb[4].mxu1 %v1667_v3 }
  0xb7   : > { %791 = vmatprep.mubr.bf16.mxu0 %v1668_v4  ;;  %904 = vmatprep.mubr.bf16.mxu1 %v1668_v4 }
  0xbe   : > { %792 = vmatmul.mubr.bf16.gmra.mrb[8].mxu0 %v1670_v5  ;;  %905 = vmatmul.mubr.bf16.gmra.mrb[8].mxu1 %v1670_v5 }
  0xbf   : > { %801 = vmatprep.mubr.bf16.mxu0 %v1671_v6  ;;  %914 = vmatprep.mubr.bf16.mxu1 %v1671_v6 }
  0xc6   : > { %802 = vmatmul.mubr.bf16.gmra.mrb[12].mxu0 %v1673_v7  ;;  %915 = vmatmul.mubr.bf16.gmra.mrb[12].mxu1 %v1673_v7 }
  0xc7   : > { %811 = vmatprep.mubr.bf16.mxu0 %v1674_v8  ;;  %924 = vmatprep.mubr.bf16.mxu1 %v1674_v8 }
  0xce   : > { %812 = vmatmul.mubr.bf16.gmra.mrb[16].mxu0 %v1676_v9  ;;  %925 = vmatmul.mubr.bf16.gmra.mrb[16].mxu1 %v1676_v9 }
  0xcf   : > { %821 = vmatprep.mubr.bf16.mxu0 %v1677_v10  ;;  %934 = vmatprep.mubr.bf16.mxu1 %v1677_v10 }
  0xd6   : > { %822 = vmatmul.mubr.bf16.gmra.mrb[20].mxu0 %v1679_v11  ;;  %935 = vmatmul.mubr.bf16.gmra.mrb[20].mxu1 %v1679_v11 }
  0xd7   : > { %831 = vmatprep.mubr.bf16.mxu0 %v1680_v12  ;;  %944 = vmatprep.mubr.bf16.mxu1 %v1680_v12 }
  0xde   : > { %832 = vmatmul.mubr.bf16.gmra.mrb[24].mxu0 %v1682_v13  ;;  %945 = vmatmul.mubr.bf16.gmra.mrb[24].mxu1 %v1682_v13 }
  0xdf   : > { %841 = vmatprep.mubr.bf16.mxu0 %v1683_v14  ;;  %954 = vmatprep.mubr.bf16.mxu1 %v1683_v14 }
  0xe6   : > { %842 = vmatmul.mubr.bf16.gmra.mrb[28].mxu0 %v1685_v15  ;;  %955 = vmatmul.mubr.bf16.gmra.mrb[28].mxu1 %v1685_v15 }
 0x181   : > { %v773_v27 = vpop.f32.mrb[0].mxu0  ;;  %v886_v28 = vpop.f32.mrb[0].mxu1 }
 0x182   : > { %v774_v29 = vadd.f32 %v773_v27, %v2108_v23  ;;  %v887_v30 = vadd.f32 %v886_v28, %v2110_v24  ;;  %v775_v31 = vpop.f32.mrb[1].mxu0  ;;  %v888_v32 = vpop.f32.mrb[1].mxu1 }
 0x183   : > { %v776_v33 = vadd.f32 %v775_v31, %v2112_v25  ;;  %v889_v34 = vadd.f32 %v888_v32, %v2114_v26  ;;  %v777_v35 = vpop.f32.mrb[2].mxu0  ;;  %v890_v36 = vpop.f32.mrb[2].mxu1 }
 0x184   : > { %v778_v37 = vadd.f32 %v777_v35, %v2108_v23  ;;  %v891_v38 = vadd.f32 %v890_v36, %v2110_v24  ;;  %v779_v39 = vpop.f32.mrb[3].mxu0  ;;  %v892_v40 = vpop.f32.mrb[3].mxu1 }
 0x185   : > { %v1444_v41 = vpack.c.bf16 %v776_v33, %v774_v29  ;;  %v1445_v42 = vpack.c.bf16 %v889_v34, %v887_v30  ;;  %v780_v43 = vadd.f32 %v779_v39, %v2112_v25  ;;  %v893_v44 = vadd.f32 %v892_v40, %v2114_v26 }
 0x187   : > { %1157 = vst [vmem:[%s2125_s22] sm:$0xff] %v1444_v41  ;;  %1158 = vst [vmem:[%s2125_s22 + $0x8] sm:$0xff] %v1445_v42  ;;  %v1446_v45 = vpack.c.bf16 %v780_v43, %v778_v37  ;;  %v1447_v46 = vpack.c.bf16 %v893_v44, %v891_v38 }
 0x189   : > { %1159 = vst [vmem:[%s2125_s22 + $0x10] sm:$0xff] %v1446_v45  ;;  %1160 = vst [vmem:[%s2125_s22 + $0x18] sm:$0xff] %v1447_v46  ;;  %v783_v47 = vpop.f32.mrb[4].mxu0  ;;  %v896_v48 = vpop.f32.mrb[4].mxu1 }
 0x18a   : > { %v784_v49 = vadd.f32 %v783_v47, %v2108_v23  ;;  %v897_v50 = vadd.f32 %v896_v48, %v2110_v24  ;;  %v785_v51 = vpop.f32.mrb[5].mxu0  ;;  %v898_v52 = vpop.f32.mrb[5].mxu1 }
 0x18b   : > { %v786_v53 = vadd.f32 %v785_v51, %v2112_v25  ;;  %v899_v54 = vadd.f32 %v898_v52, %v2114_v26  ;;  %v787_v55 = vpop.f32.mrb[6].mxu0  ;;  %v900_v56 = vpop.f32.mrb[6].mxu1 }
 0x18c   : > { %v788_v57 = vadd.f32 %v787_v55, %v2108_v23  ;;  %v901_v58 = vadd.f32 %v900_v56, %v2110_v24  ;;  %v789_v59 = vpop.f32.mrb[7].mxu0  ;;  %v902_v60 = vpop.f32.mrb[7].mxu1 }
 0x18d   : > { %v1448_v61 = vpack.c.bf16 %v786_v53, %v784_v49  ;;  %v1449_v62 = vpack.c.bf16 %v899_v54, %v897_v50  ;;  %v790_v63 = vadd.f32 %v789_v59, %v2112_v25  ;;  %v903_v0 = vadd.f32 %v902_v60, %v2114_v26 }
 0x18f   : > { %1161 = vst [vmem:[%s2125_s22 + $0x20] sm:$0xff] %v1448_v61  ;;  %1162 = vst [vmem:[%s2125_s22 + $0x28] sm:$0xff] %v1449_v62  ;;  %v1450_v1 = vpack.c.bf16 %v790_v63, %v788_v57  ;;  %v1451_v2 = vpack.c.bf16 %v903_v0, %v901_v58 }
 0x191   : > { %1163 = vst [vmem:[%s2125_s22 + $0x30] sm:$0xff] %v1450_v1  ;;  %1164 = vst [vmem:[%s2125_s22 + $0x38] sm:$0xff] %v1451_v2  ;;  %v793_v3 = vpop.f32.mrb[8].mxu0  ;;  %v906_v4 = vpop.f32.mrb[8].mxu1 }
 0x192   : > { %v794_v5 = vadd.f32 %v793_v3, %v2108_v23  ;;  %v907_v6 = vadd.f32 %v906_v4, %v2110_v24  ;;  %v795_v7 = vpop.f32.mrb[9].mxu0  ;;  %v908_v8 = vpop.f32.mrb[9].mxu1 }
 0x193   : > { %v796_v9 = vadd.f32 %v795_v7, %v2112_v25  ;;  %v909_v10 = vadd.f32 %v908_v8, %v2114_v26  ;;  %v797_v11 = vpop.f32.mrb[10].mxu0  ;;  %v910_v12 = vpop.f32.mrb[10].mxu1 }
 0x194   : > { %v798_v13 = vadd.f32 %v797_v11, %v2108_v23  ;;  %v911_v14 = vadd.f32 %v910_v12, %v2110_v24  ;;  %v799_v15 = vpop.f32.mrb[11].mxu0  ;;  %v912_v16 = vpop.f32.mrb[11].mxu1 }
 0x195   : > { %v1452_v17 = vpack.c.bf16 %v796_v9, %v794_v5  ;;  %v1453_v18 = vpack.c.bf16 %v909_v10, %v907_v6  ;;  %v800_v19 = vadd.f32 %v799_v15, %v2112_v25  ;;  %v913_v20 = vadd.f32 %v912_v16, %v2114_v26 }
 0x197   : > { %1165 = vst [vmem:[%s2125_s22 + $0x40] sm:$0xff] %v1452_v17  ;;  %1166 = vst [vmem:[%s2125_s22 + $0x48] sm:$0xff] %v1453_v18  ;;  %v1454_v21 = vpack.c.bf16 %v800_v19, %v798_v13  ;;  %v1455_v22 = vpack.c.bf16 %v913_v20, %v911_v14 }
 0x199   : > { %1167 = vst [vmem:[%s2125_s22 + $0x50] sm:$0xff] %v1454_v21  ;;  %1168 = vst [vmem:[%s2125_s22 + $0x58] sm:$0xff] %v1455_v22  ;;  %v803_v27 = vpop.f32.mrb[12].mxu0  ;;  %v916_v28 = vpop.f32.mrb[12].mxu1 }
 0x19a   : > { %v804_v29 = vadd.f32 %v803_v27, %v2108_v23  ;;  %v917_v30 = vadd.f32 %v916_v28, %v2110_v24  ;;  %v805_v31 = vpop.f32.mrb[13].mxu0  ;;  %v918_v32 = vpop.f32.mrb[13].mxu1 }
 0x19b   : > { %v806_v33 = vadd.f32 %v805_v31, %v2112_v25  ;;  %v919_v34 = vadd.f32 %v918_v32, %v2114_v26  ;;  %v807_v35 = vpop.f32.mrb[14].mxu0  ;;  %v920_v36 = vpop.f32.mrb[14].mxu1 }
 0x19c   : > { %v808_v37 = vadd.f32 %v807_v35, %v2108_v23  ;;  %v921_v38 = vadd.f32 %v920_v36, %v2110_v24  ;;  %v809_v39 = vpop.f32.mrb[15].mxu0  ;;  %v922_v40 = vpop.f32.mrb[15].mxu1 }
 0x19d   : > { %v1456_v41 = vpack.c.bf16 %v806_v33, %v804_v29  ;;  %v1457_v42 = vpack.c.bf16 %v919_v34, %v917_v30  ;;  %v810_v43 = vadd.f32 %v809_v39, %v2112_v25  ;;  %v923_v44 = vadd.f32 %v922_v40, %v2114_v26 }
 0x19f   : > { %1169 = vst [vmem:[%s2125_s22 + $0x60] sm:$0xff] %v1456_v41  ;;  %1170 = vst [vmem:[%s2125_s22 + $0x68] sm:$0xff] %v1457_v42  ;;  %v1458_v45 = vpack.c.bf16 %v810_v43, %v808_v37  ;;  %v1459_v46 = vpack.c.bf16 %v923_v44, %v921_v38 }
 0x1a1   : > { %1171 = vst [vmem:[%s2125_s22 + $0x70] sm:$0xff] %v1458_v45  ;;  %1172 = vst [vmem:[%s2125_s22 + $0x78] sm:$0xff] %v1459_v46  ;;  %v813_v47 = vpop.f32.mrb[16].mxu0  ;;  %v926_v48 = vpop.f32.mrb[16].mxu1 }
 0x1a2   : > { %v814_v49 = vadd.f32 %v813_v47, %v2108_v23  ;;  %v927_v50 = vadd.f32 %v926_v48, %v2110_v24  ;;  %v815_v51 = vpop.f32.mrb[17].mxu0  ;;  %v928_v52 = vpop.f32.mrb[17].mxu1 }
 0x1a3   : > { %v816_v53 = vadd.f32 %v815_v51, %v2112_v25  ;;  %v929_v54 = vadd.f32 %v928_v52, %v2114_v26  ;;  %v817_v55 = vpop.f32.mrb[18].mxu0  ;;  %v930_v56 = vpop.f32.mrb[18].mxu1 }
 0x1a4   : > { %v818_v57 = vadd.f32 %v817_v55, %v2108_v23  ;;  %v931_v58 = vadd.f32 %v930_v56, %v2110_v24  ;;  %v819_v59 = vpop.f32.mrb[19].mxu0  ;;  %v932_v60 = vpop.f32.mrb[19].mxu1 }
 0x1a5   : > { %v1460_v61 = vpack.c.bf16 %v816_v53, %v814_v49  ;;  %v1461_v62 = vpack.c.bf16 %v929_v54, %v927_v50  ;;  %v820_v63 = vadd.f32 %v819_v59, %v2112_v25  ;;  %v933_v0 = vadd.f32 %v932_v60, %v2114_v26 }
 0x1a7   : > { %1173 = vst [vmem:[%s2125_s22 + $0x80] sm:$0xff] %v1460_v61  ;;  %1174 = vst [vmem:[%s2125_s22 + $0x88] sm:$0xff] %v1461_v62  ;;  %v1462_v1 = vpack.c.bf16 %v820_v63, %v818_v57  ;;  %v1463_v2 = vpack.c.bf16 %v933_v0, %v931_v58 }
 0x1a9   : > { %1175 = vst [vmem:[%s2125_s22 + $0x90] sm:$0xff] %v1462_v1  ;;  %1176 = vst [vmem:[%s2125_s22 + $0x98] sm:$0xff] %v1463_v2  ;;  %v823_v3 = vpop.f32.mrb[20].mxu0  ;;  %v936_v4 = vpop.f32.mrb[20].mxu1 }
 0x1aa   : > { %v824_v5 = vadd.f32 %v823_v3, %v2108_v23  ;;  %v937_v6 = vadd.f32 %v936_v4, %v2110_v24  ;;  %v825_v7 = vpop.f32.mrb[21].mxu0  ;;  %v938_v8 = vpop.f32.mrb[21].mxu1 }
 0x1ab   : > { %v826_v9 = vadd.f32 %v825_v7, %v2112_v25  ;;  %v939_v10 = vadd.f32 %v938_v8, %v2114_v26  ;;  %v827_v11 = vpop.f32.mrb[22].mxu0  ;;  %v940_v12 = vpop.f32.mrb[22].mxu1 }
 0x1ac   : > { %v828_v13 = vadd.f32 %v827_v11, %v2108_v23  ;;  %v941_v14 = vadd.f32 %v940_v12, %v2110_v24  ;;  %v829_v15 = vpop.f32.mrb[23].mxu0  ;;  %v942_v16 = vpop.f32.mrb[23].mxu1 }
 0x1ad   : > { %v1464_v17 = vpack.c.bf16 %v826_v9, %v824_v5  ;;  %v1465_v18 = vpack.c.bf16 %v939_v10, %v937_v6  ;;  %v830_v19 = vadd.f32 %v829_v15, %v2112_v25  ;;  %v943_v20 = vadd.f32 %v942_v16, %v2114_v26 }
 0x1af   : > { %1177 = vst [vmem:[%s2125_s22 + $0xa0] sm:$0xff] %v1464_v17  ;;  %1178 = vst [vmem:[%s2125_s22 + $0xa8] sm:$0xff] %v1465_v18  ;;  %v1466_v21 = vpack.c.bf16 %v830_v19, %v828_v13  ;;  %v1467_v22 = vpack.c.bf16 %v943_v20, %v941_v14 }
 0x1b1   : > { %1179 = vst [vmem:[%s2125_s22 + $0xb0] sm:$0xff] %v1466_v21  ;;  %1180 = vst [vmem:[%s2125_s22 + $0xb8] sm:$0xff] %v1467_v22  ;;  %v833_v27 = vpop.f32.mrb[24].mxu0  ;;  %v946_v28 = vpop.f32.mrb[24].mxu1 }
 0x1b2   : > { %v834_v29 = vadd.f32 %v833_v27, %v2108_v23  ;;  %v947_v30 = vadd.f32 %v946_v28, %v2110_v24  ;;  %v835_v31 = vpop.f32.mrb[25].mxu0  ;;  %v948_v32 = vpop.f32.mrb[25].mxu1 }
 0x1b3   : > { %v836_v33 = vadd.f32 %v835_v31, %v2112_v25  ;;  %v949_v34 = vadd.f32 %v948_v32, %v2114_v26  ;;  %v837_v35 = vpop.f32.mrb[26].mxu0  ;;  %v950_v36 = vpop.f32.mrb[26].mxu1 }
 0x1b4   : > { %v838_v37 = vadd.f32 %v837_v35, %v2108_v23  ;;  %v951_v38 = vadd.f32 %v950_v36, %v2110_v24  ;;  %v839_v39 = vpop.f32.mrb[27].mxu0  ;;  %v952_v40 = vpop.f32.mrb[27].mxu1 }
 0x1b5   : > { %v1468_v41 = vpack.c.bf16 %v836_v33, %v834_v29  ;;  %v1469_v42 = vpack.c.bf16 %v949_v34, %v947_v30  ;;  %v840_v43 = vadd.f32 %v839_v39, %v2112_v25  ;;  %v953_v44 = vadd.f32 %v952_v40, %v2114_v26 }
 0x1b7   : > { %1181 = vst [vmem:[%s2125_s22 + $0xc0] sm:$0xff] %v1468_v41  ;;  %1182 = vst [vmem:[%s2125_s22 + $0xc8] sm:$0xff] %v1469_v42  ;;  %v1470_v45 = vpack.c.bf16 %v840_v43, %v838_v37  ;;  %v1471_v46 = vpack.c.bf16 %v953_v44, %v951_v38 }
 0x1b9   : > { %1183 = vst [vmem:[%s2125_s22 + $0xd0] sm:$0xff] %v1470_v45  ;;  %1184 = vst [vmem:[%s2125_s22 + $0xd8] sm:$0xff] %v1471_v46  ;;  %v843_v47 = vpop.f32.mrb[28].mxu0  ;;  %v956_v48 = vpop.f32.mrb[28].mxu1 }
 0x1ba   : > { %v844_v49 = vadd.f32 %v843_v47, %v2108_v23  ;;  %v957_v50 = vadd.f32 %v956_v48, %v2110_v24  ;;  %v845_v51 = vpop.f32.mrb[29].mxu0  ;;  %v958_v52 = vpop.f32.mrb[29].mxu1 }
 0x1bb   : > { %v846_v53 = vadd.f32 %v845_v51, %v2112_v25  ;;  %v959_v54 = vadd.f32 %v958_v52, %v2114_v26  ;;  %v847_v55 = vpop.f32.mrb[30].mxu0  ;;  %v960_v56 = vpop.f32.mrb[30].mxu1 }
 0x1bc   : > { %v848_v57 = vadd.f32 %v847_v55, %v2108_v23  ;;  %v961_v58 = vadd.f32 %v960_v56, %v2110_v24  ;;  %v849_v59 = vpop.f32.mrb[31].mxu0  ;;  %v962_v60 = vpop.f32.mrb[31].mxu1 }
 0x1bd   : > { %v1472_v61 = vpack.c.bf16 %v846_v53, %v844_v49  ;;  %v1473_v62 = vpack.c.bf16 %v959_v54, %v957_v50  ;;  %v850_v63 = vadd.f32 %v849_v59, %v2112_v25  ;;  %v963_v0 = vadd.f32 %v962_v60, %v2114_v26 }
 0x1bf   : > { %1185 = vst [vmem:[%s2125_s22 + $0xe0] sm:$0xff] %v1472_v61  ;;  %1186 = vst [vmem:[%s2125_s22 + $0xe8] sm:$0xff] %v1473_v62  ;;  %v1474_v23 = vpack.c.bf16 %v850_v63, %v848_v57  ;;  %v1475_v24 = vpack.c.bf16 %v963_v0, %v961_v58 }
 0x1c1   : > { %1187 = vst [vmem:[%s2125_s22 + $0xf0] sm:$0xff] %v1474_v23  ;;  %1188 = vst [vmem:[%s2125_s22 + $0xf8] sm:$0xff] %v1475_v24 }
 0x1c2   : > { %1785 = shalt.err (!%p1782_p11)
}
 0x1c3   : > { %s1786_s9 = scalar_lea.hbm %s2216_s15, 4096  ;;  %s1790_s29 = scalar_lea.hbm %s2274_s3, 8192 }
 0x1c4   : > { %p1787_p0 = scmp.ne.s32.totalorder %s2216_s15, %s1786_s9  ;;  %p1791_p6 = scmp.lt.u32.totalorder %s2216_s15, %s2274_s3 }
 0x1c5   : > { %p1792_p7 = scmp.lt.u32.totalorder %s1790_s29, %s1786_s9  ;;  %p1794_p8 = scmp.lt.u32.totalorder %s1786_s9, %s2216_s15 }
 0x1c6   : > { %p1788_p4 = pnand %p1787_p0, %p2289_p12 }
 0x1c7   : > { %p1793_p2 = por %p1792_p7, %p1791_p6 }
 0x1c8   : > { %p1789_p13 = pneg %p1788_p4 }
 0x1c9   : > { %p1795_p1 = por %p1794_p8, %p1793_p2 }
 0x1cb   : > { %p1796_p10 = pnand %p1795_p1, %p1789_p13 }
 0x1cd   : > { %1799 = shalt.err (!%p1796_p10)
}
 0x1ce   : > { %s1868_s22 = smov 256   ;;  %s1869_s24 = smov 16  }
 0x1cf   : > { %1487 = dma.vmem_to_hbm [thread:$0]  (%p2289_p12), %s2218_s6, 4096, %s2216_s15, %s1190_s26, %s1868_s22, %s1868_s22, %s1869_s24  }
 0x1d0 PF: > { %s1221_s7 = sand.u32 1, %s1838_s12   ;;  %p2290_p3 = scmp.ne.s32.totalorder %s2282_s23, 0 }
 0x1d1   : > { %p2291_p5 = scmp.ge.s32.totalorder %s1858_s17, 2  ;;  %s1222_s8 = scalar_lea.sflag [#allocation4], %s1221_s7 }
 0x1d3   : > { %p1501_p9 = pnand %p2291_p5, %p2290_p3 }
 0x1d5   : > { %1833 = dma.done.wait (!%p1501_p9), %s1222_s8, 4096  }
 0x1d6   : > { %1835 = vsyncadd (!%p1501_p9), %s1222_s8, 4294963200  ;;  %s20_s17 = sadd.s32 1, %s1858_s17   ;;  %s2292_s12 = smov %s1842_s13 }
 0x1d7   : > { %p17_p11 = scmp.ge.s32.totalorder %s20_s17, 4   ;;  %s2293_s13 = smov %s1846_s14 }
 0x1d8   : > { %s2294_s14 = smov %s2032_s30  ;;  %s2295_s15 = smov %s1854_s16 }
 0x1d9   : > { %s2296_s16 = smov %s2298_s11  ;;  %19 = sbr.rel (!%p17_p11) target bundleno = 7 (0x7), region = 85 }
 0x1e0   :  { %1227 = vsyncpa [#allocation3], 1 }
 0x1e1   :  { %1229 = vsyncpa [#allocation3 + $0x1], 1 }
 0x1e2   :  { %1230 = vsyncpa [#allocation6], 1 }
 0x1e3   :  { %1231 = vsyncpa [#allocation4], 1 }
 0x1e4   :  { %1233 = vsyncpa [#allocation4 + $0x1], 1 }

</bundles_post_ra>
